<compile_context>
chip_gen: v7x
topology: tpu7x:2x2x1
jax: 0.10.0
libtpu: 0.0.40
codegen_flags: <defaults>
</compile_context>

<pallas_src>
import jax
import jax.numpy as jnp
from jax import lax
from jax.experimental import pallas as pl
from jax.experimental.pallas import tpu as pltpu


def _round_up(x, m):
    return ((x + m - 1) // m) * m


# ------------------------------- the kernel -------------------------------

def _make_kernel(Bt, Dp):
    """Kernel processing Bt batch elements (each a Dp-row group) per grid step."""

    def kernel(at_ref,     # (Bt*Dp, N)   bf16  stacked, padded all_x^T
               wspt_ref,   # (N, N)       bf16  W_spatial^T (resident)
               wch_ref,    # (Dp, Dp)     bf16  W_channel, zero-padded
               wout_ref,   # (dim_out,Dp) f32   W_out, zero-padded cols
               bout_ref,   # (dim_out,1)  f32   b_out
               maskb_ref,  # (Dp, 1)      f32   0 for real rows, -1e30 for pad rows
               out_ref,    # (Bt, dim_out, N)
               xs_ref):    # (Bt*Dp, N)   bf16  VMEM scratch for x_s^T
        # Dominant matmul, batch-folded: x_s^T = all_x^T @ W_sp^T for all Bt groups
        # at once (bf16 operands, f32 accumulate).
        xs_ref[...] = jnp.dot(
            at_ref[...], wspt_ref[...],
            preferred_element_type=jnp.float32).astype(jnp.bfloat16)

        wch = wch_ref[...]
        wout = wout_ref[...]
        bout = bout_ref[...]
        maskb = maskb_ref[...]

        def body(b, carry):
            row = pl.multiple_of(b * Dp, Dp)          # 16-aligned slice offsets
            at_b = at_ref[pl.ds(row, Dp), :]          # (Dp, N) bf16
            xs_b = xs_ref[pl.ds(row, Dp), :]          # (Dp, N) bf16

            # x_c^T = W_ch @ x_s^T  (tiny, bf16 operands, f32 accumulate)
            xc = jnp.dot(wch, xs_b, preferred_element_type=jnp.float32) + maskb

            # softmax over the (masked) feature axis, deferred normalization
            m = jnp.max(xc, axis=0, keepdims=True)            # (1, N)
            e = jnp.exp(xc - m)                               # (Dp, N); pad rows -> 0
            s = jnp.sum(e, axis=0, keepdims=True)             # (1, N)
            a_s = e * pl.reciprocal(s, approx=True)           # (Dp, N)

            # x = relu(all_x * (1 + a_s)); dropout == identity.  f32 elementwise.
            x = jnp.maximum(at_b.astype(jnp.float32) * (1.0 + a_s), 0.0)

            # out^T = W_out @ x + b_out  (tiny; kept f32 for accuracy), lane-dense store
            out_b = (jnp.dot(wout, x, preferred_element_type=jnp.float32) + bout)
            out_ref[b] = out_b.astype(out_ref.dtype)
            return carry

        lax.fori_loop(0, Bt, body, 0, unroll=True)

    return kernel


# ----------------------- one-time parameter preparation ----------------------

def prepare_params(params):
    """Hoisted out of the per-call path: transpose/cast/pad weights once."""
    dim_out, D = params["w_out"].shape
    Dp = _round_up(D, 16)

    wch = jnp.zeros((Dp, Dp), jnp.float32).at[:D, :D].set(params["w_channel"])
    wout = jnp.zeros((dim_out, Dp), jnp.float32).at[:, :D].set(params["w_out"])
    maskb = jnp.where(jnp.arange(Dp)[:, None] < D, 0.0, -1e30).astype(jnp.float32)

    return {
        "wspt": params["w_spatial"].T.astype(jnp.bfloat16),   # (N, N) bf16
        "wch": wch.astype(jnp.bfloat16),                      # (Dp, Dp) bf16
        "wout": wout,                                         # (dim_out, Dp) f32
        "bout": params["b_out"].reshape(dim_out, 1).astype(jnp.float32),
        "maskb": maskb,                                       # (Dp, 1) f32
    }


# --------------------------------- wrapper ---------------------------------

def sum_attention_dot5(bus, metro, taxi, prep):
    B, N, dim_out = bus.shape
    D = 3 * dim_out
    Dp = prep["wch"].shape[0]

    # Batch tiling: target ~256 MXU rows (Bt*Dp) per grid step; split B into
    # near-equal tiles so padding is minimal.  (Multiple grid steps also give the
    # v7x dual-TC a parallel axis when B is large.)
    max_bt = max(1, 256 // Dp)
    n_tiles = -(-B // max_bt)
    Bt = -(-B // n_tiles)
    B_pad = n_tiles * Bt

    # Build padded all_x^T: (B_pad, Dp, N) -> flatten to (B_pad*Dp, N) in HBM layout,
    # shipped as bf16 (halves the per-step activation DMA).
    all_x_t = jnp.concatenate(
        [jnp.swapaxes(bus, 1, 2), jnp.swapaxes(metro, 1, 2), jnp.swapaxes(taxi, 1, 2)],
        axis=1)                                               # (B, D, N)
    all_x_t = jnp.pad(all_x_t, ((0, B_pad - B), (0, Dp - D), (0, 0)))
    at_flat = all_x_t.astype(jnp.bfloat16).reshape(B_pad * Dp, N)

    def full(shape):
        n = len(shape)
        return pl.BlockSpec(shape, lambda i, n=n: (0,) * n)   # resident weights

    grid_spec = pltpu.PrefetchScalarGridSpec(
        num_scalar_prefetch=0,
        grid=(n_tiles,),
        in_specs=[
            pl.BlockSpec((Bt * Dp, N), lambda i: (i, 0)),     # activations per tile
            full((N, N)),
            full((Dp, Dp)),
            full((dim_out, Dp)),
            full((dim_out, 1)),
            full((Dp, 1)),
        ],
        out_specs=pl.BlockSpec((Bt, dim_out, N), lambda i: (i, 0, 0)),
        scratch_shapes=[pltpu.VMEM((Bt * Dp, N), jnp.bfloat16)],
    )

    out_t = pl.pallas_call(
        _make_kernel(Bt, Dp),
        out_shape=jax.ShapeDtypeStruct((B_pad, dim_out, N), bus.dtype),
        grid_spec=grid_spec,
        compiler_params=pltpu.CompilerParams(
            dimension_semantics=("parallel",),
            # worst-case footprint ~12 MiB at N=1386, Bt=16; keep headroom only.
            vmem_limit_bytes=24 * 1024 * 1024),
    )(at_flat, prep["wspt"], prep["wch"], prep["wout"], prep["bout"], prep["maskb"])

    # Kernel emits the lane-dense transpose; restore (B, N, dim_out).
    return jnp.swapaxes(out_t[:B], 1, 2)


# --------------------------- deterministic params ---------------------------

def init_params(key, dim_out, num_of_vertices):
    att_dim = dim_out * 3
    ks = jax.random.split(key, 4)

    def u(k, shape, fan_in):
        bound = 1.0 / jnp.sqrt(float(fan_in))
        return jax.random.uniform(k, shape, jnp.float32, -bound, bound)

    return {
        # nn.Conv1d(N, N, 1, bias=False) -> weight (N, N, 1) squeezed to (N, N)
        "w_spatial": u(ks[0], (num_of_vertices, num_of_vertices), num_of_vertices),
        # nn.Linear(att_dim, att_dim, bias=False) -> (att_dim, att_dim)
        "w_channel": u(ks[1], (att_dim, att_dim), att_dim),
        # nn.Linear(att_dim, dim_out) -> weight (dim_out, att_dim), bias (dim_out,)
        "w_out": u(ks[2], (dim_out, att_dim), att_dim),
        "b_out": u(ks[3], (dim_out,), att_dim),
    }


# ------------------------------ pure-JAX ref --------------------------------

def reference(bus, metro, taxi, p):
    all_x = jnp.concatenate([bus, metro, taxi], axis=-1)                  # (B, N, D)
    x_s = jnp.einsum("ij,bjd->bid", p["w_spatial"], all_x)                # Conv1d(N,N,1)
    x_c = x_s @ p["w_channel"].T                                          # Linear(D,D)
    a_s = jax.nn.softmax(x_c, axis=-1)
    x = all_x * a_s
    x = jax.nn.relu(all_x + x)
    return x @ p["w_out"].T + p["b_out"]


# ----------------------------------- main -----------------------------------

if __name__ == "__main__":
    B, dim_out = 2, 4
    # Original module hardcodes num_of_vertices = 1386; the kernel is N-agnostic,
    # so use a small lane-aligned N for the demo.
    N = 256

    key = jax.random.PRNGKey(0)
    kb, km, kt, kp = jax.random.split(key, 4)
    bus = jax.random.normal(kb, (B, N, dim_out), jnp.float32)
    metro = jax.random.normal(km, (B, N, dim_out), jnp.float32)
    taxi = jax.random.normal(kt, (B, N, dim_out), jnp.float32)

    params = init_params(kp, dim_out, N)
    prep = prepare_params(params)        # one-time weight prep (out of the hot path)

    fwd = jax.jit(sum_attention_dot5)
    out = fwd(bus, metro, taxi, prep)
    jax.block_until_ready(out)

    ref = reference(bus, metro, taxi, params)
    assert out.shape == (B, N, dim_out)
    # bf16 activations/weights on the MXU + approx reciprocal => relaxed tolerance.
    max_err = float(jnp.max(jnp.abs(out - ref)))
    assert jnp.allclose(out, ref, atol=2e-2, rtol=2e-2), (
        f"mismatch vs reference (max|diff|={max_err})")
    print("KERNEL_OK")
</pallas_src>

<mosaic_0001>
module attributes {stable_mosaic.version = 11 : i64} {
  func.func @kernel(%arg0: i32, %arg1: memref<32x256xbf16, #tpu.memory_space<vmem>>, %arg2: memref<256x256xbf16, #tpu.memory_space<vmem>>, %arg3: memref<16x16xbf16, #tpu.memory_space<vmem>>, %arg4: memref<4x16xf32, #tpu.memory_space<vmem>>, %arg5: memref<4x1xf32, #tpu.memory_space<vmem>>, %arg6: memref<16x1xf32, #tpu.memory_space<vmem>>, %arg7: memref<2x4x256xf32, #tpu.memory_space<vmem>>, %arg8: memref<32x256xbf16, #tpu.memory_space<vmem>>) attributes {dimension_semantics = [#tpu.dimension_semantics<parallel>], iteration_bounds = array<i64: 1>, scalar_prefetch = 0 : i64, scratch_operands = 1 : i64, tpu.core_type = #tpu.core_type<tc>, window_params = [{transform_indices = @transform_0, window_bounds = array<i64: 32, 256>}, {pipeline_mode = #tpu.pipeline_mode<synchronous>, transform_indices = @transform_1, window_bounds = array<i64: 256, 256>}, {pipeline_mode = #tpu.pipeline_mode<synchronous>, transform_indices = @transform_2, window_bounds = array<i64: 16, 16>}, {pipeline_mode = #tpu.pipeline_mode<synchronous>, transform_indices = @transform_3, window_bounds = array<i64: 4, 16>}, {pipeline_mode = #tpu.pipeline_mode<synchronous>, transform_indices = @transform_4, window_bounds = array<i64: 4, 1>}, {pipeline_mode = #tpu.pipeline_mode<synchronous>, transform_indices = @transform_5, window_bounds = array<i64: 16, 1>}, {transform_indices = @transform_6, window_bounds = array<i64: 2, 4, 256>}]} {
    %c0 = arith.constant 0 : index
    %c0_0 = arith.constant 0 : index
    %0 = vector.load %arg1[%c0, %c0_0] : memref<32x256xbf16, #tpu.memory_space<vmem>>, vector<32x256xbf16>
    %c0_1 = arith.constant 0 : index
    %c0_2 = arith.constant 0 : index
    %1 = vector.load %arg2[%c0_1, %c0_2] : memref<256x256xbf16, #tpu.memory_space<vmem>>, vector<256x256xbf16>
    %cst = arith.constant dense<0.000000e+00> : vector<32x256xf32>
    %2 = tpu.matmul %0, %1, %cst {dimension_numbers = #tpu.dot_dimension_numbers<[1], [0], [0], [1], [0, 0, 1, 1], [], []>} : vector<32x256xbf16>, vector<256x256xbf16>, vector<32x256xf32> -> vector<32x256xf32>
    %3 = arith.truncf %2 : vector<32x256xf32> to vector<32x256xbf16>
    %c0_3 = arith.constant 0 : index
    %c0_4 = arith.constant 0 : index
    %4 = vector.load %arg8[%c0_3, %c0_4] : memref<32x256xbf16, #tpu.memory_space<vmem>>, vector<32x256xbf16>
    tpu.vector_store %arg8[%c0_3, %c0_4], %3 {strides = array<i32>} : memref<32x256xbf16, #tpu.memory_space<vmem>>, vector<32x256xbf16>,
    %c0_5 = arith.constant 0 : index
    %c0_6 = arith.constant 0 : index
    %5 = vector.load %arg3[%c0_5, %c0_6] : memref<16x16xbf16, #tpu.memory_space<vmem>>, vector<16x16xbf16>
    %c0_7 = arith.constant 0 : index
    %c0_8 = arith.constant 0 : index
    %6 = vector.load %arg4[%c0_7, %c0_8] : memref<4x16xf32, #tpu.memory_space<vmem>>, vector<4x16xf32>
    %c0_9 = arith.constant 0 : index
    %c0_10 = arith.constant 0 : index
    %7 = vector.load %arg5[%c0_9, %c0_10] : memref<4x1xf32, #tpu.memory_space<vmem>>, vector<4x1xf32>
    %c0_11 = arith.constant 0 : index
    %c0_12 = arith.constant 0 : index
    %8 = vector.load %arg6[%c0_11, %c0_12] : memref<16x1xf32, #tpu.memory_space<vmem>>, vector<16x1xf32>
    %c0_i32 = arith.constant 0 : i32
    %c16_i32 = arith.constant 16 : i32
    %9 = arith.muli %c0_i32, %c16_i32 : i32
    %10 = tpu.assume_multiple %9, 16 : i32
    %11 = arith.index_cast %10 : i32 to index
    %c0_13 = arith.constant 0 : index
    %12 = vector.load %arg1[%11, %c0_13] : memref<32x256xbf16, #tpu.memory_space<vmem>>, vector<16x256xbf16>
    %13 = arith.index_cast %10 : i32 to index
    %c0_14 = arith.constant 0 : index
    %14 = vector.load %arg8[%13, %c0_14] : memref<32x256xbf16, #tpu.memory_space<vmem>>, vector<16x256xbf16>
    %cst_15 = arith.constant dense<0.000000e+00> : vector<16x256xf32>
    %15 = tpu.matmul %5, %14, %cst_15 {dimension_numbers = #tpu.dot_dimension_numbers<[1], [0], [0], [1], [0, 0, 1, 1], [], []>} : vector<16x16xbf16>, vector<16x256xbf16>, vector<16x256xf32> -> vector<16x256xf32>
    %16 = vector.broadcast %8 : vector<16x1xf32> to vector<16x256xf32>
    %17 = arith.addf %15, %16 : vector<16x256xf32>
    %cst_16 = arith.constant dense<0xFF800000> : vector<256xf32>
    %18 = vector.multi_reduction <maximumf>, %17, %cst_16 [0] : vector<16x256xf32> to vector<256xf32>
    %19 = vector.shape_cast %18 : vector<256xf32> to vector<1x256xf32>
    %20 = vector.broadcast %19 : vector<1x256xf32> to vector<16x256xf32>
    %21 = arith.subf %17, %20 : vector<16x256xf32>
    %22 = math.exp %21 : vector<16x256xf32>
    %cst_17 = arith.constant dense<0.000000e+00> : vector<256xf32>
    %23 = vector.multi_reduction <add>, %22, %cst_17 [0] : vector<16x256xf32> to vector<256xf32>
    %24 = vector.shape_cast %23 : vector<256xf32> to vector<1x256xf32>
    %25 = tpu.reciprocal %24 {approx = true} : vector<1x256xf32> -> vector<1x256xf32>
    %26 = vector.broadcast %25 : vector<1x256xf32> to vector<16x256xf32>
    %27 = arith.mulf %22, %26 : vector<16x256xf32>
    %28 = arith.extf %12 : vector<16x256xbf16> to vector<16x256xf32>
    %cst_18 = arith.constant 1.000000e+00 : f32
    %29 = vector.broadcast %cst_18 : f32 to vector<16x256xf32>
    %30 = arith.addf %29, %27 : vector<16x256xf32>
    %31 = arith.mulf %28, %30 : vector<16x256xf32>
    %cst_19 = arith.constant 0.000000e+00 : f32
    %32 = vector.broadcast %cst_19 : f32 to vector<16x256xf32>
    %33 = arith.maximumf %31, %32 : vector<16x256xf32>
    %cst_20 = arith.constant dense<0.000000e+00> : vector<4x256xf32>
    %34 = tpu.matmul %6, %33, %cst_20 {dimension_numbers = #tpu.dot_dimension_numbers<[1], [0], [0], [1], [0, 0, 1, 1], [], []>} : vector<4x16xf32>, vector<16x256xf32>, vector<4x256xf32> -> vector<4x256xf32>
    %35 = vector.broadcast %7 : vector<4x1xf32> to vector<4x256xf32>
    %36 = arith.addf %34, %35 : vector<4x256xf32>
    %37 = arith.index_cast %c0_i32 : i32 to index
    %c0_21 = arith.constant 0 : index
    %c0_22 = arith.constant 0 : index
    %38 = vector.load %arg7[%37, %c0_21, %c0_22] : memref<2x4x256xf32, #tpu.memory_space<vmem>>, vector<1x4x256xf32>
    %39 = vector.shape_cast %38 : vector<1x4x256xf32> to vector<4x256xf32>
    %40 = vector.shape_cast %36 : vector<4x256xf32> to vector<1x4x256xf32>
    tpu.vector_store %arg7[%37, %c0_21, %c0_22], %40 {strides = array<i32>} : memref<2x4x256xf32, #tpu.memory_space<vmem>>, vector<1x4x256xf32>,
    %c1_i32 = arith.constant 1 : i32
    %c16_i32_23 = arith.constant 16 : i32
    %41 = arith.muli %c1_i32, %c16_i32_23 : i32
    %42 = tpu.assume_multiple %41, 16 : i32
    %43 = arith.index_cast %42 : i32 to index
    %c0_24 = arith.constant 0 : index
    %44 = vector.load %arg1[%43, %c0_24] : memref<32x256xbf16, #tpu.memory_space<vmem>>, vector<16x256xbf16>
    %45 = arith.index_cast %42 : i32 to index
    %c0_25 = arith.constant 0 : index
    %46 = vector.load %arg8[%45, %c0_25] : memref<32x256xbf16, #tpu.memory_space<vmem>>, vector<16x256xbf16>
    %cst_26 = arith.constant dense<0.000000e+00> : vector<16x256xf32>
    %47 = tpu.matmul %5, %46, %cst_26 {dimension_numbers = #tpu.dot_dimension_numbers<[1], [0], [0], [1], [0, 0, 1, 1], [], []>} : vector<16x16xbf16>, vector<16x256xbf16>, vector<16x256xf32> -> vector<16x256xf32>
    %48 = vector.broadcast %8 : vector<16x1xf32> to vector<16x256xf32>
    %49 = arith.addf %47, %48 : vector<16x256xf32>
    %cst_27 = arith.constant dense<0xFF800000> : vector<256xf32>
    %50 = vector.multi_reduction <maximumf>, %49, %cst_27 [0] : vector<16x256xf32> to vector<256xf32>
    %51 = vector.shape_cast %50 : vector<256xf32> to vector<1x256xf32>
    %52 = vector.broadcast %51 : vector<1x256xf32> to vector<16x256xf32>
    %53 = arith.subf %49, %52 : vector<16x256xf32>
    %54 = math.exp %53 : vector<16x256xf32>
    %cst_28 = arith.constant dense<0.000000e+00> : vector<256xf32>
    %55 = vector.multi_reduction <add>, %54, %cst_28 [0] : vector<16x256xf32> to vector<256xf32>
    %56 = vector.shape_cast %55 : vector<256xf32> to vector<1x256xf32>
    %57 = tpu.reciprocal %56 {approx = true} : vector<1x256xf32> -> vector<1x256xf32>
    %58 = vector.broadcast %57 : vector<1x256xf32> to vector<16x256xf32>
    %59 = arith.mulf %54, %58 : vector<16x256xf32>
    %60 = arith.extf %44 : vector<16x256xbf16> to vector<16x256xf32>
    %cst_29 = arith.constant 1.000000e+00 : f32
    %61 = vector.broadcast %cst_29 : f32 to vector<16x256xf32>
    %62 = arith.addf %61, %59 : vector<16x256xf32>
    %63 = arith.mulf %60, %62 : vector<16x256xf32>
    %cst_30 = arith.constant 0.000000e+00 : f32
    %64 = vector.broadcast %cst_30 : f32 to vector<16x256xf32>
    %65 = arith.maximumf %63, %64 : vector<16x256xf32>
    %cst_31 = arith.constant dense<0.000000e+00> : vector<4x256xf32>
    %66 = tpu.matmul %6, %65, %cst_31 {dimension_numbers = #tpu.dot_dimension_numbers<[1], [0], [0], [1], [0, 0, 1, 1], [], []>} : vector<4x16xf32>, vector<16x256xf32>, vector<4x256xf32> -> vector<4x256xf32>
    %67 = vector.broadcast %7 : vector<4x1xf32> to vector<4x256xf32>
    %68 = arith.addf %66, %67 : vector<4x256xf32>
    %69 = arith.index_cast %c1_i32 : i32 to index
    %c0_32 = arith.constant 0 : index
    %c0_33 = arith.constant 0 : index
    %70 = vector.load %arg7[%69, %c0_32, %c0_33] : memref<2x4x256xf32, #tpu.memory_space<vmem>>, vector<1x4x256xf32>
    %71 = vector.shape_cast %70 : vector<1x4x256xf32> to vector<4x256xf32>
    %72 = vector.shape_cast %68 : vector<4x256xf32> to vector<1x4x256xf32>
    tpu.vector_store %arg7[%69, %c0_32, %c0_33], %72 {strides = array<i32>} : memref<2x4x256xf32, #tpu.memory_space<vmem>>, vector<1x4x256xf32>,
    %c2_i32 = arith.constant 2 : i32
    return
  }
  func.func @transform_0(%arg0: i32) -> (i32, i32) {
    %c0_i32 = arith.constant 0 : i32
    %c0_i32_0 = arith.constant 0 : i32
    return %arg0, %c0_i32 : i32, i32
  }
  func.func @transform_1(%arg0: i32) -> (i32, i32) {
    %c0_i32 = arith.constant 0 : i32
    %c0_i32_0 = arith.constant 0 : i32
    %c0_i32_1 = arith.constant 0 : i32
    return %c0_i32, %c0_i32_0 : i32, i32
  }
  func.func @transform_2(%arg0: i32) -> (i32, i32) {
    %c0_i32 = arith.constant 0 : i32
    %c0_i32_0 = arith.constant 0 : i32
    %c0_i32_1 = arith.constant 0 : i32
    return %c0_i32, %c0_i32_0 : i32, i32
  }
  func.func @transform_3(%arg0: i32) -> (i32, i32) {
    %c0_i32 = arith.constant 0 : i32
    %c0_i32_0 = arith.constant 0 : i32
    %c0_i32_1 = arith.constant 0 : i32
    return %c0_i32, %c0_i32_0 : i32, i32
  }
  func.func @transform_4(%arg0: i32) -> (i32, i32) {
    %c0_i32 = arith.constant 0 : i32
    %c0_i32_0 = arith.constant 0 : i32
    %c0_i32_1 = arith.constant 0 : i32
    return %c0_i32, %c0_i32_0 : i32, i32
  }
  func.func @transform_5(%arg0: i32) -> (i32, i32) {
    %c0_i32 = arith.constant 0 : i32
    %c0_i32_0 = arith.constant 0 : i32
    %c0_i32_1 = arith.constant 0 : i32
    return %c0_i32, %c0_i32_0 : i32, i32
  }
  func.func @transform_6(%arg0: i32) -> (i32, i32, i32) {
    %c0_i32 = arith.constant 0 : i32
    %c0_i32_0 = arith.constant 0 : i32
    %c0_i32_1 = arith.constant 0 : i32
    return %arg0, %c0_i32, %c0_i32_0 : i32, i32, i32
  }
}

</mosaic_0001>

<bundles_post_ra>
// kernel: sum_attention_dot5.1
= control target key start
LH: loop header
LB: loop body
LE: loop exit
PB: predicated region body
PF: predicated region fallthrough
CT: control target
= control target key end

     0   :  { %11 = vsyncpa [#allocation4], 0  ;;  %s1111_s0 = inlined_call_operand.vmem [shape: bf16[32,256], index: 0, kind: input, shape index: {}]   ;;  %s1112_s1 = inlined_call_operand.hbm [shape: bf16[256,256], index: 1, kind: input, shape index: {}]   ;;  %s1113_s2 = inlined_call_operand.vmem [shape: bf16[16,16], index: 2, kind: input, shape index: {}]   ;;  %s1114_s3 = inlined_call_operand.vmem [shape: f32[4,16], index: 3, kind: input, shape index: {}]   ;;  %s1115_s4 = inlined_call_operand.vmem [shape: f32[4,1], index: 4, kind: input, shape index: {}]   ;;  %s1116_s5 = inlined_call_operand.vmem [shape: f32[16,1], index: 5, kind: input, shape index: {}]   ;;  %s1117_s6 = inlined_call_operand.hbm [shape: f32[2,4,256], index: 6, kind: output, shape index: {}]  }
   0x1   :  { %12 = vsyncpa [#allocation5], 0  ;;  %s935_s21 = smov [#allocation3]   ;;  %s887_s25 = scalar_lea.hbm %s1112_s1, 4096 }
   0x2   :  { %s20_s22 = sshll.u32 %s935_s21, 4  ;;  %p888_p0 = scmp.ne.s32.totalorder %s1112_s1, %s887_s25  ;;  %s21_s22 = int_to_ptr.vmem [resolvable:$true] %s20_s22 }
   0x3   :  { %p891_p1 = scmp.lt.u32.totalorder %s887_s25, %s1112_s1 }
   0x5   :  { %p893_p2 = pnand %p891_p1, %p888_p0 }
   0x7   :  { %896 = shalt.err (!%p893_p2)
}
   0x8   :  { %s897_s30 = scalar_lea.vmem %s21_s22, 4096  ;;  %p902_p4 = scmp.lt.s32.totalorder %s21_s22, %s21_s22 }
   0x9   :  { %p898_p3 = scmp.ne.s32.totalorder %s21_s22, %s897_s30  ;;  %p903_p5 = scmp.lt.s32.totalorder %s897_s30, %s897_s30 }
   0xb   :  { %p904_p6 = por %p903_p5, %p902_p4 }
   0xd   :  { %p905_p7 = pnand %p904_p6, %p898_p3 }
   0xf   :  { %908 = shalt.err (!%p905_p7)
}
  0x10   :  { %s936_s7 = smov 128   ;;  %s937_s8 = smov 8  }
  0x11   :  { %26 = dma.hbm_to_vmem [thread:$0]  %s1112_s1, 4096, %s21_s22, [#allocation4], %s936_s7, %s936_s7, %s937_s8  }
  0x12   :  { %931 = dma.done.wait [#allocation4], 4096  }
  0x13   :  { %932 = vsyncadd [#allocation4], 4294963200  ;;  %v810_v0 = vld [vmem:[#allocation3 + $0x4] ss:$8 sps:$4 sm:$0xff]   ;;  %v812_v1 = vld [vmem:[#allocation3] ss:$8 sps:$4 sm:$0xff]  }
  0x14   :  { %255 = vmatprep.subr.bf16.mxu0 %v810_v0  ;;  %v813_v2 = vld [vmem:[#allocation3 + $0x14] ss:$8 sps:$4 sm:$0xff]   ;;  %v815_v3 = vld [vmem:[#allocation3 + $0x10] ss:$8 sps:$4 sm:$0xff]   ;;  %v816_v4 = vld [vmem:[#allocation3 + $0x24] ss:$8 sps:$4 sm:$0xff]  }
  0x15   :  { %256 = vmatpush1.bf16.msra.mxu0 %v812_v1  ;;  %v818_v5 = vld [vmem:[#allocation3 + $0x20] ss:$8 sps:$4 sm:$0xff]   ;;  %v819_v6 = vld [vmem:[#allocation3 + $0x34] ss:$8 sps:$4 sm:$0xff]   ;;  %v821_v7 = vld [vmem:[#allocation3 + $0x30] ss:$8 sps:$4 sm:$0xff]  }
  0x16   :  { %257 = vmatprep.subr.bf16.mxu0 %v813_v2  ;;  %v822_v8 = vld [vmem:[#allocation3 + $0x44] ss:$8 sps:$4 sm:$0xff]   ;;  %v824_v9 = vld [vmem:[#allocation3 + $0x40] ss:$8 sps:$4 sm:$0xff]   ;;  %v825_v10 = vld [vmem:[#allocation3 + $0x54] ss:$8 sps:$4 sm:$0xff]  }
  0x17   :  { %v827_v11 = vld [vmem:[#allocation3 + $0x50] ss:$8 sps:$4 sm:$0xff]   ;;  %v828_v12 = vld [vmem:[#allocation3 + $0x64] ss:$8 sps:$4 sm:$0xff]   ;;  %v830_v16 = vld [vmem:[#allocation3 + $0x60] ss:$8 sps:$4 sm:$0xff]  }
  0x18   :  { %v994_v13 = vld [vmem:[%s1111_s0] sm:$0xff]  ;;  %v999_v14 = vld [vmem:[%s1111_s0 + $0x8] sm:$0xff]  ;;  %v831_v17 = vld [vmem:[#allocation3 + $0x74] ss:$8 sps:$4 sm:$0xff]   ;;  %v938_v36 = vmov 0   ;;  %vm347_vm0 = vcmask 130048  }
  0x19   :  { %258 = vmatpush1.bf16.msra.mxu0 %v815_v3  ;;  %v752_v15 = vcombine.high %v994_v13, %v999_v14  ;;  %v833_v18 = vld [vmem:[#allocation3 + $0x70] ss:$8 sps:$4 sm:$0xff]   ;;  %v834_v19 = vld [vmem:[#allocation3 + $0x84] ss:$8 sps:$4 sm:$0xff]   ;;  %v836_v20 = vld [vmem:[#allocation3 + $0x80] ss:$8 sps:$4 sm:$0xff]   ;;  %v751_v35 = vcombine.low %v994_v13, %v999_v14  ;;  %383 = vmatprep.mubr.bf16.mxu1 %v938_v36 }
  0x1a   :  { %259 = vmatprep.subr.bf16.mxu0 %v816_v4  ;;  %v837_v21 = vld [vmem:[#allocation3 + $0x94] ss:$8 sps:$4 sm:$0xff]   ;;  %v839_v22 = vld [vmem:[#allocation3 + $0x90] ss:$8 sps:$4 sm:$0xff]   ;;  %v840_v23 = vld [vmem:[#allocation3 + $0xa4] ss:$8 sps:$4 sm:$0xff]   ;;  %808 = vset.pattern.permute.xlu0 %v938_v36 }
  0x1b   :  { %287 = vmatprep.mubr.bf16.mxu0 %v752_v15  ;;  %v842_v24 = vld [vmem:[#allocation3 + $0xa0] ss:$8 sps:$4 sm:$0xff]   ;;  %v843_v25 = vld [vmem:[#allocation3 + $0xb4] ss:$8 sps:$4 sm:$0xff]   ;;  %v845_v26 = vld [vmem:[#allocation3 + $0xb0] ss:$8 sps:$4 sm:$0xff]   ;;  %809 = vset.pattern.permute.xlu1 %v938_v36 }
  0x1c   :  { %v846_v27 = vld [vmem:[#allocation3 + $0xc4] ss:$8 sps:$4 sm:$0xff]   ;;  %v848_v28 = vld [vmem:[#allocation3 + $0xc0] ss:$8 sps:$4 sm:$0xff]   ;;  %v849_v29 = vld [vmem:[#allocation3 + $0xd4] ss:$8 sps:$4 sm:$0xff]  }
  0x1d   :  { %260 = vmatpush1.bf16.msra.mxu0 %v818_v5  ;;  %v851_v30 = vld [vmem:[#allocation3 + $0xd0] ss:$8 sps:$4 sm:$0xff]   ;;  %v852_v31 = vld [vmem:[#allocation3 + $0xe4] ss:$8 sps:$4 sm:$0xff]   ;;  %v854_v32 = vld [vmem:[#allocation3 + $0xe0] ss:$8 sps:$4 sm:$0xff]  }
  0x1e   :  { %261 = vmatprep.subr.bf16.mxu0 %v819_v6  ;;  %v855_v33 = vld [vmem:[#allocation3 + $0xf4] ss:$8 sps:$4 sm:$0xff]   ;;  %v857_v34 = vld [vmem:[#allocation3 + $0xf0] ss:$8 sps:$4 sm:$0xff]   ;;  %v320_v39 = vld [vmem:[%s1116_s5] sm:$0xff]  ;;  %v939_v56 = vmov 0.0  }
  0x1f   :  { %v1011_v37 = vld [vmem:[%s1111_s0 + $0x10] sm:$0xff]  ;;  %v1016_v38 = vld [vmem:[%s1111_s0 + $0x18] sm:$0xff]  ;;  %334 = vperm.xlu0 %808, %v320_v39   ;;  %v321_v42 = vld [vmem:[%s1116_s5 + $0x8] sm:$0xff] }
  0x20   :  { %v754_v40 = vcombine.high %v1011_v37, %v1016_v38  ;;  %v753_v41 = vcombine.low %v1011_v37, %v1016_v38  ;;  %v1031_v49 = vld [vmem:[%s1113_s2] sm:$0xff]  }
  0x21   :  { %262 = vmatpush1.bf16.msra.mxu0 %v821_v7  ;;  %v319_v57 = vld [vmem:[%s1115_s4] sm:$0xf] }
  0x22   :  { %263 = vmatprep.subr.bf16.mxu0 %v822_v8  ;;  %458 = vperm.xlu1 %809, %v319_v57  }
  0x23   :  { %339 = vperm.xlu0 %808, %v321_v42  }
  0x25   :  { %264 = vmatpush1.bf16.msra.mxu0 %v824_v9 }
  0x26   :  { %265 = vmatprep.subr.bf16.mxu0 %v825_v10 }
  0x29   :  { %266 = vmatpush1.bf16.msra.mxu0 %v827_v11 }
  0x2a   :  { %267 = vmatprep.subr.bf16.mxu0 %v828_v12 }
  0x2d   :  { %268 = vmatpush1.bf16.msra.mxu0 %v830_v16 }
  0x2e   :  { %269 = vmatprep.subr.bf16.mxu0 %v831_v17 }
  0x31   :  { %270 = vmatpush1.bf16.msra.mxu0 %v833_v18 }
  0x32   :  { %271 = vmatprep.subr.bf16.mxu0 %v834_v19 }
  0x35   :  { %272 = vmatpush1.bf16.msra.mxu0 %v836_v20 }
  0x36   :  { %273 = vmatprep.subr.bf16.mxu0 %v837_v21 }
  0x39   :  { %274 = vmatpush1.bf16.msra.mxu0 %v839_v22 }
  0x3a   :  { %275 = vmatprep.subr.bf16.mxu0 %v840_v23 }
  0x3d   :  { %276 = vmatpush1.bf16.msra.mxu0 %v842_v24 }
  0x3e   :  { %277 = vmatprep.subr.bf16.mxu0 %v843_v25 }
  0x41   :  { %278 = vmatpush1.bf16.msra.mxu0 %v845_v26 }
  0x42   :  { %279 = vmatprep.subr.bf16.mxu0 %v846_v27 }
  0x45   :  { %280 = vmatpush1.bf16.msra.mxu0 %v848_v28 }
  0x46   :  { %281 = vmatprep.subr.bf16.mxu0 %v849_v29 }
  0x49   :  { %282 = vmatpush1.bf16.msra.mxu0 %v851_v30 }
  0x4a   :  { %283 = vmatprep.subr.bf16.mxu0 %v852_v31 }
  0x4d   :  { %284 = vmatpush1.bf16.msra.mxu0 %v854_v32 }
  0x4e   :  { %285 = vmatprep.subr.bf16.mxu0 %v855_v33 }
  0x51   :  { %286 = vmatpush1.bf16.msra.mxu0 %v857_v34 }
  0x54   :  { %288 = vmatmul.mubr.bf16.vlgmr.msra.gmra.mrb[0].mxu0 %v751_v35 }
  0x55   :  { %297 = vmatprep.mubr.bf16.mxu0 %v754_v40 }
  0x5c   :  { %298 = vmatmul.mubr.bf16.gmra.mrb[4].mxu0 %v753_v41 }
  0x9e   :  { %v1051_v58 = vpop.permute.xlu0 %334 }
  0xa2   :  { %v1053_v61 = vpop.permute.xlu0 %339 }
 0x127   :  { %v289_v43 = vpop.f32.mrb[0].mxu0 }
 0x128   :  { %v291_v44 = vpop.f32.mrb[1].mxu0 }
 0x129   :  { %v293_v45 = vpop.f32.mrb[2].mxu0 }
 0x12a   :  { %v308_v46 = vpack.c.bf16 %v293_v45, %v289_v43  ;;  %v295_v47 = vpop.f32.mrb[3].mxu0 }
 0x12b   :  { %v309_v48 = vpack.c.bf16 %v295_v47, %v291_v44 }
 0x12d   :  { %351 = vmatprep.subr.bf16.mxu1 %v309_v48 }
 0x12e   :  { %352 = vmatpush1.bf16.msra.mxu1 %v308_v46 }
 0x12f   :  { %v1035_v50 = vpop.f32.mrb[4].mxu0 }
 0x130   :  { %v1037_v51 = vpop.f32.mrb[5].mxu0 }
 0x131   :  { %788 = vmatmul.mubr.msk.bf16.vlgmr.msra.gmra.mrb[0].mxu1 %vm347_vm0, %v1031_v49  ;;  %v1039_v52 = vpop.f32.mrb[6].mxu0 }
 0x132   :  { %v310_v53 = vpack.c.bf16 %v1039_v52, %v1035_v50  ;;  %v1043_v54 = vpop.f32.mrb[7].mxu0  ;;  %528 = vmatprep.mubr.f32.mxu1 %v939_v56 }
 0x133   :  { %v311_v55 = vpack.c.bf16 %v1043_v54, %v1037_v51 }
 0x204   :  { %v385_v59 = vpop.f32.mrb[0].mxu1 }
 0x205   :  { %v387_v60 = vpop.f32.mrb[1].mxu1  ;;  %v386_v63 = vadd.f32 %v385_v59, %v1051_v58  ;;  %v440_v59 = vunpack.c.l.bf16 %v994_v13 }
 0x206   :  { %v389_v62 = vpop.f32.mrb[2].mxu1  ;;  %v388_v2 = vadd.f32 %v387_v60, %v1051_v58  ;;  %v442_v60 = vunpack.c.l.bf16 %v999_v14 }
 0x207   :  { %v390_v0 = vadd.f32 %v389_v62, %v1053_v61  ;;  %v391_v1 = vpop.f32.mrb[3].mxu1 }
 0x208   :  { %v392_v3 = vadd.f32 %v391_v1, %v1053_v61  ;;  %v441_v1 = vunpack.c.h.bf16 %v994_v13  ;;  %v1066_v13 = vld [vmem:[%s1114_s3] sm:$0xf]  ;;  %s940_s3 = smov [#allocation6]  }
 0x209   :  { %v394_v4 = vmax.f32 %v386_v63, %v390_v0  ;;  %s737_s24 = sshll.u32 %s940_s3, 4  ;;  %s738_s24 = int_to_ptr.vmem [resolvable:$true] %s737_s24 }
 0x20a   :  { %v401_v5 = vmax.f32 %v388_v2, %v392_v3  ;;  %s909_s25 = scalar_lea.vmem %s738_s24, 256  ;;  %p914_p9 = scmp.lt.s32.totalorder %s738_s24, %s738_s24 }
 0x20b   :  { %v395_v6 = vrot.slane %v394_v4, 4  ;;  %p910_p8 = scmp.ne.s32.totalorder %s738_s24, %s909_s25  ;;  %p915_p10 = scmp.lt.s32.totalorder %s909_s25, %s909_s25 }
 0x20c   :  { %v402_v7 = vrot.slane %v401_v5, 4 }
 0x20d   :  { %v396_v8 = vmax.f32 %v394_v4, %v395_v6  ;;  %p916_p11 = por %p915_p10, %p914_p9 }
 0x20e   :  { %v403_v9 = vmax.f32 %v401_v5, %v402_v7 }
 0x20f   :  { %v397_v10 = vrot.slane %v396_v8, 2  ;;  %p917_p12 = pnand %p916_p11, %p910_p8 }
 0x210   :  { %v404_v11 = vrot.slane %v403_v9, 2 }
 0x211   :  { %v398_v12 = vmax.f32 %v396_v8, %v397_v10 }
 0x212   :  { %v405_v15 = vmax.f32 %v403_v9, %v404_v11 }
 0x213   :  { %v399_v16 = vrot.slane %v398_v12, 1 }
 0x214   :  { %v406_v17 = vrot.slane %v405_v15, 1 }
 0x215   :  { %v400_v18 = vmax.f32 %v398_v12, %v399_v16 }
 0x216   :  { %v407_v19 = vmax.f32 %v405_v15, %v406_v17 }
 0x217   :  { %v408_v20 = vsub.f32 %v386_v63, %v400_v18  ;;  %v410_v21 = vsub.f32 %v390_v0, %v400_v18 }
 0x218   :  { %v409_v22 = vsub.f32 %v388_v2, %v407_v19  ;;  %v411_v23 = vsub.f32 %v392_v3, %v407_v19  ;;  %v443_v2 = vunpack.c.h.bf16 %v999_v14  ;;  %v1080_v14 = vpop.permute.xlu1 %458 }
 0x219   :  { %v412_v24 = vmul.f32 1.442695, %v408_v20  ;;  %v416_v25 = vmul.f32 1.442695, %v410_v21 }
 0x21a   :  { %v414_v26 = vmul.f32 1.442695, %v409_v22  ;;  %v418_v27 = vmul.f32 1.442695, %v411_v23 }
 0x21b   :  { %863 = vpow2.f32 %v412_v24 }
 0x21c   :  { %865 = vpow2.f32 %v416_v25 }
 0x21d   :  { %867 = vpow2.f32 %v414_v26 }
 0x21e   :  { %869 = vpow2.f32 %v418_v27 }
 0x225   :  { %v864_v28 = vpop.eup %863 }
 0x226   :  { %v866_v29 = vpop.eup %865 }
 0x227   :  { %v868_v30 = vpop.eup %867  ;;  %v420_v31 = vadd.f32 %v866_v29, %v864_v28 }
 0x228   :  { %v870_v32 = vpop.eup %869 }
 0x229   :  { %v421_v33 = vrot.slane %v420_v31, 4  ;;  %v427_v34 = vadd.f32 %v870_v32, %v868_v30 }
 0x22b   :  { %v422_v35 = vadd.f32 %v421_v33, %v420_v31  ;;  %v428_v39 = vrot.slane %v427_v34, 4 }
 0x22d   :  { %v423_v40 = vrot.slane %v422_v35, 2  ;;  %v429_v41 = vadd.f32 %v428_v39, %v427_v34 }
 0x22f   :  { %v424_v42 = vadd.f32 %v423_v40, %v422_v35  ;;  %v430_v43 = vrot.slane %v429_v41, 2 }
 0x231   :  { %v425_v44 = vrot.slane %v424_v42, 1  ;;  %v431_v45 = vadd.f32 %v430_v43, %v429_v41 }
 0x233   :  { %v426_v46 = vadd.f32 %v425_v44, %v424_v42  ;;  %v432_v47 = vrot.slane %v431_v45, 1 }
 0x235   :  { %871 = vrcp.f32 %v426_v46  ;;  %v433_v48 = vadd.f32 %v432_v47, %v431_v45 }
 0x237   :  { %873 = vrcp.f32 %v433_v48 }
 0x23f   :  { %v872_v57 = vpop.eup %871 }
 0x240   :  { %v436_v62 = vmul.f32 %v872_v57, %v864_v28  ;;  %v438_v63 = vmul.f32 %v872_v57, %v866_v29 }
 0x241   :  { %v874_v0 = vpop.eup %873 }
 0x242   :  { %v437_v3 = vmul.f32 %v874_v0, %v868_v30  ;;  %v439_v4 = vmul.f32 %v874_v0, %v870_v32  ;;  %v444_v5 = vadd.f32 1.0, %v436_v62  ;;  %v446_v6 = vadd.f32 1.0, %v438_v63 }
 0x244   :  { %v445_v7 = vadd.f32 1.0, %v437_v3  ;;  %v447_v8 = vadd.f32 1.0, %v439_v4  ;;  %v448_v9 = vmul.f32 %v444_v5, %v440_v59  ;;  %v450_v10 = vmul.f32 %v446_v6, %v442_v60 }
 0x246   :  { %v449_v11 = vmul.f32 %v445_v7, %v441_v1  ;;  %v451_v12 = vmul.f32 %v447_v8, %v443_v2  ;;  %v452_v15 = vmax.f32 %v448_v9, 0.0  ;;  %v454_v16 = vmax.f32 %v450_v10, 0.0 }
 0x248   :  { %v453_v17 = vmax.f32 %v449_v11, 0.0  ;;  %v455_v18 = vmax.f32 %v451_v12, 0.0  ;;  %v796_v19 = vpack.c.bf16 %v454_v16, %v452_v15  ;;  %v639_v15 = vunpack.c.l.bf16 %v1011_v37 }
 0x249   :  { %v641_v16 = vunpack.c.l.bf16 %v1016_v38 }
 0x24a   :  { %v794_v20 = vpack.c.bf16 %v455_v18, %v453_v17 }
 0x24c   :  { %795 = vmatprep.subr.bf16.mxu1 %v794_v20  ;;  %v640_v20 = vunpack.c.h.bf16 %v1011_v37 }
 0x24d   :  { %797 = vmatpush1.bf16.msra.mxu1 %v796_v19 }
 0x24e   :  { %550 = vmatprep.subr.bf16.mxu1 %v311_v55 }
 0x250   :  { %789 = vmatmul.mubr.msk.f32.vlgmr.msra.gmra.mrb[4].mxu1 %vm347_vm0, %v1066_v13 }
 0x251   :  { %551 = vmatpush1.bf16.msra.mxu1 %v310_v53  ;;  %582 = vmatprep.mubr.bf16.mxu1 %v938_v36 }
 0x254   :  { %792 = vmatmul.mubr.msk.bf16.vlgmr.msra.gmra.mrb[8].mxu1 %vm347_vm0, %v1031_v49 }
 0x255   :  { %719 = vmatprep.mubr.f32.mxu1 %v939_v56 }
 0x323   :  { %v530_v21 = vpop.f32.mrb[4].mxu1 }
 0x324   :  { %v531_v51 = vadd.f32 %v530_v21, %v1080_v14  ;;  %v532_v54 = vpop.f32.mrb[5].mxu1  ;;  %v642_v21 = vunpack.c.h.bf16 %v1016_v38 }
 0x325   :  { %v533_v55 = vadd.f32 %v532_v54, %v1080_v14 }
 0x327   :  { %v537_v22 = vcombine.low %v531_v51, %v533_v55  ;;  %v584_v23 = vpop.f32.mrb[8].mxu1 }
 0x328   :  { %v586_v24 = vpop.f32.mrb[9].mxu1  ;;  %v585_v36 = vadd.f32 %v584_v23, %v1051_v58 }
 0x329   :  { %539 = vst [vmem:[#allocation6] sm:$0xff] %v537_v22  ;;  %v588_v50 = vpop.f32.mrb[10].mxu1  ;;  %v587_v53 = vadd.f32 %v586_v24, %v1051_v58 }
 0x32a   :  { %v589_v52 = vadd.f32 %v588_v50, %v1053_v61  ;;  %v590_v49 = vpop.f32.mrb[11].mxu1 }
 0x32b   :  { %v591_v56 = vadd.f32 %v590_v49, %v1053_v61 }
 0x32c   :  { %v593_v25 = vmax.f32 %v585_v36, %v589_v52 }
 0x32d   :  { %v600_v26 = vmax.f32 %v587_v53, %v591_v56 }
 0x32e   :  { %v594_v27 = vrot.slane %v593_v25, 4 }
 0x32f   :  { %v601_v28 = vrot.slane %v600_v26, 4 }
 0x330   :  { %v595_v29 = vmax.f32 %v593_v25, %v594_v27 }
 0x331   :  { %v602_v30 = vmax.f32 %v600_v26, %v601_v28 }
 0x332   :  { %v596_v31 = vrot.slane %v595_v29, 2 }
 0x333   :  { %v603_v32 = vrot.slane %v602_v30, 2 }
 0x334   :  { %v597_v33 = vmax.f32 %v595_v29, %v596_v31 }
 0x335   :  { %v604_v34 = vmax.f32 %v602_v30, %v603_v32 }
 0x336   :  { %v598_v35 = vrot.slane %v597_v33, 1 }
 0x337   :  { %v605_v39 = vrot.slane %v604_v34, 1 }
 0x338   :  { %v599_v40 = vmax.f32 %v597_v33, %v598_v35 }
 0x339   :  { %v606_v41 = vmax.f32 %v604_v34, %v605_v39 }
 0x33a   :  { %v607_v42 = vsub.f32 %v585_v36, %v599_v40  ;;  %v609_v43 = vsub.f32 %v589_v52, %v599_v40 }
 0x33b   :  { %v608_v44 = vsub.f32 %v587_v53, %v606_v41  ;;  %v610_v58 = vsub.f32 %v591_v56, %v606_v41 }
 0x33c   :  { %v611_v45 = vmul.f32 1.442695, %v607_v42  ;;  %v615_v61 = vmul.f32 1.442695, %v609_v43 }
 0x33d   :  { %v613_v46 = vmul.f32 1.442695, %v608_v44  ;;  %v617_v47 = vmul.f32 1.442695, %v610_v58 }
 0x33e   :  { %875 = vpow2.f32 %v611_v45 }
 0x33f   :  { %877 = vpow2.f32 %v615_v61 }
 0x340   :  { %879 = vpow2.f32 %v613_v46 }
 0x341   :  { %881 = vpow2.f32 %v617_v47 }
 0x348   :  { %v876_v48 = vpop.eup %875 }
 0x349   :  { %v878_v57 = vpop.eup %877 }
 0x34a   :  { %v880_v59 = vpop.eup %879  ;;  %v619_v60 = vadd.f32 %v878_v57, %v876_v48 }
 0x34b   :  { %v882_v62 = vpop.eup %881 }
 0x34c   :  { %v620_v63 = vrot.slane %v619_v60, 4  ;;  %v626_v0 = vadd.f32 %v882_v62, %v880_v59 }
 0x34e   :  { %v621_v1 = vadd.f32 %v620_v63, %v619_v60  ;;  %v627_v2 = vrot.slane %v626_v0, 4 }
 0x350   :  { %v622_v3 = vrot.slane %v621_v1, 2  ;;  %v628_v4 = vadd.f32 %v627_v2, %v626_v0 }
 0x352   :  { %v623_v5 = vadd.f32 %v622_v3, %v621_v1  ;;  %v629_v6 = vrot.slane %v628_v4, 2 }
 0x354   :  { %v624_v7 = vrot.slane %v623_v5, 1  ;;  %v630_v8 = vadd.f32 %v629_v6, %v628_v4 }
 0x356   :  { %v625_v9 = vadd.f32 %v624_v7, %v623_v5  ;;  %v631_v10 = vrot.slane %v630_v8, 1 }
 0x358   :  { %883 = vrcp.f32 %v625_v9  ;;  %v632_v11 = vadd.f32 %v631_v10, %v630_v8 }
 0x35a   :  { %885 = vrcp.f32 %v632_v11 }
 0x362   :  { %v884_v12 = vpop.eup %883 }
 0x363   :  { %v635_v17 = vmul.f32 %v884_v12, %v876_v48  ;;  %v637_v18 = vmul.f32 %v884_v12, %v878_v57 }
 0x364   :  { %v886_v19 = vpop.eup %885 }
 0x365   :  { %v636_v51 = vmul.f32 %v886_v19, %v880_v59  ;;  %v638_v54 = vmul.f32 %v886_v19, %v882_v62  ;;  %v643_v55 = vadd.f32 1.0, %v635_v17  ;;  %v645_v22 = vadd.f32 1.0, %v637_v18 }
 0x367   :  { %v644_v23 = vadd.f32 1.0, %v636_v51  ;;  %v646_v24 = vadd.f32 1.0, %v638_v54  ;;  %v647_v50 = vmul.f32 %v643_v55, %v639_v15  ;;  %v649_v36 = vmul.f32 %v645_v22, %v641_v16 }
 0x369   :  { %v648_v52 = vmul.f32 %v644_v23, %v640_v20  ;;  %v650_v49 = vmul.f32 %v646_v24, %v642_v21  ;;  %v651_v53 = vmax.f32 %v647_v50, 0.0  ;;  %v653_v56 = vmax.f32 %v649_v36, 0.0 }
 0x36b   :  { %v652_v25 = vmax.f32 %v648_v52, 0.0  ;;  %v654_v26 = vmax.f32 %v650_v49, 0.0  ;;  %v800_v27 = vpack.c.bf16 %v653_v56, %v651_v53 }
 0x36d   :  { %v798_v28 = vpack.c.bf16 %v654_v26, %v652_v25 }
 0x36f   :  { %799 = vmatprep.subr.bf16.mxu1 %v798_v28 }
 0x370   :  { %801 = vmatpush1.bf16.msra.mxu1 %v800_v27 }
 0x373   :  { %793 = vmatmul.mubr.msk.f32.vlgmr.msra.gmra.mrb[6].mxu1 %vm347_vm0, %v1066_v13 }
 0x446   :  { %v721_v37 = vpop.f32.mrb[6].mxu1 }
 0x447   :  { %v722_v38 = vadd.f32 %v721_v37, %v1080_v14  ;;  %v723_v29 = vpop.f32.mrb[7].mxu1 }
 0x448   :  { %v724_v30 = vadd.f32 %v723_v29, %v1080_v14 }
 0x44a   :  { %v728_v31 = vcombine.low %v722_v38, %v724_v30 }
 0x44c   :  { %731 = vst [vmem:[#allocation6 + $0x8] sm:$0xff] %v728_v31 }
 0x44d   :  { %920 = shalt.err (!%p917_p12)
}
 0x44e   :  { %s921_s28 = scalar_lea.hbm %s1117_s6, 256 }
 0x44f   :  { %p922_p13 = scmp.ne.s32.totalorder %s1117_s6, %s921_s28  ;;  %p925_p0 = scmp.lt.u32.totalorder %s921_s28, %s1117_s6 }
 0x451   :  { %p927_p1 = pnand %p925_p0, %p922_p13 }
 0x453   :  { %930 = shalt.err (!%p927_p1)
}
 0x454   :  { %743 = dma.vmem_to_hbm [thread:$0]  %s738_s24, 256, %s1117_s6, [#allocation5], %s936_s7, %s936_s7, %s937_s8  }
 0x455   :  { %933 = dma.done.wait [#allocation5], 256  }
 0x456   :  { %934 = vsyncadd [#allocation5], 4294967040 }
 0x457   :  { %747 = vsyncpa [#allocation4], 1 }
 0x458   :  { %748 = vsyncpa [#allocation5], 1 }

</bundles_post_ra>
